<compile_context>
chip_gen: v5e
topology: v5e:2x2
jax: 0.10.0
libtpu: 0.0.40
codegen_flags: <defaults>
</compile_context>

<pallas_src>
import functools
import math

import jax
import jax.numpy as jnp
from jax import lax
from jax.experimental import pallas as pl
from jax.experimental.pallas import tpu as pltpu


def _round_up(x, m):
    return ((x + m - 1) // m) * m


def _gelu_exact(x):
    # PyTorch nn.GELU() default = exact erf formulation.
    return 0.5 * x * (1.0 + lax.erf(x * (1.0 / math.sqrt(2.0))))


def _gelu_tanh(x):
    # EUP-friendly tanh approximation (use via approx_gelu=True).
    return jax.nn.gelu(x, approximate=True)


def _text_inversion_kernel(x_ref, w1_ref, b1_ref, w2_ref, b2_ref, w3_ref, b3_ref,
                           o_ref, *, approx_gelu):
    act = _gelu_tanh if approx_gelu else _gelu_exact
    cdt = w1_ref.dtype  # MXU operand dtype (f32 or bf16); accumulation is f32.

    x = x_ref[...].astype(cdt)

    # Layer 1: Linear + GELU   (Dropout == identity in eval)
    h = jnp.dot(x, w1_ref[...], preferred_element_type=jnp.float32) + b1_ref[...]
    h = act(h)

    # Layer 2: Linear + GELU   (Dropout == identity in eval)
    h = jnp.dot(h.astype(cdt), w2_ref[...],
                preferred_element_type=jnp.float32) + b2_ref[...]
    h = act(h)

    # Layer 3: Linear (output padded to a lane-dense 128-multiple width)
    out = jnp.dot(h.astype(cdt), w3_ref[...],
                  preferred_element_type=jnp.float32) + b3_ref[...]
    o_ref[...] = out.astype(o_ref.dtype)


def _default_block_b(B):
    """Large batch tiles for MXU utilization; >=2 grid steps when possible
    so v7x megacore can shard the 'parallel' batch axis across both cores."""
    if B >= 2048:
        return 1024
    if B >= 16:
        return _round_up(-(-B // 2), 8)   # ~B/2, rounded to the 8-sublane grain
    return _round_up(max(B, 1), 8)


@functools.partial(jax.jit,
                   static_argnames=("block_b", "use_bf16_matmul", "approx_gelu"))
def text_inversion_forward(x, w1, b1, w2, b2, w3, b3, *, block_b=None,
                           use_bf16_matmul=False, approx_gelu=False):
    """x: (B, input_dim); weights already (in, out); biases (1, out)."""
    B, d_in = x.shape
    d_hid = w1.shape[1]
    d_out = w3.shape[1]

    if block_b is None:
        block_b = _default_block_b(B)

    # Lane-dense output slab: pad the last Linear's output dim to 128 lanes so
    # the output tile uses full unmasked vector stores; slice back below.
    d_out_p = _round_up(d_out, 128)
    if d_out_p != d_out:
        w3 = jnp.pad(w3, ((0, 0), (0, d_out_p - d_out)))
        b3 = jnp.pad(b3, ((0, 0), (0, d_out_p - d_out)))

    # Pad batch to a multiple of block_b (rows are independent; zero rows are
    # computed and then sliced off).  Lets block_b be chosen for performance
    # rather than forced to a divisor of B.
    n_tiles = -(-B // block_b)
    B_pad = n_tiles * block_b
    if B_pad != B:
        x = jnp.pad(x, ((0, B_pad - B), (0, 0)))

    if use_bf16_matmul:
        # bf16 MXU operands (f32 accumulation kept via preferred_element_type).
        w1 = w1.astype(jnp.bfloat16)
        w2 = w2.astype(jnp.bfloat16)
        w3 = w3.astype(jnp.bfloat16)
    # Biases stay f32 and are added to the f32 accumulator.

    out = pl.pallas_call(
        functools.partial(_text_inversion_kernel, approx_gelu=approx_gelu),
        out_shape=jax.ShapeDtypeStruct((B_pad, d_out_p), x.dtype),
        grid_spec=pltpu.PrefetchScalarGridSpec(
            num_scalar_prefetch=0,
            grid=(n_tiles,),
            in_specs=[
                # activations: tiled along batch
                pl.BlockSpec((block_b, d_in), lambda i: (i, 0)),
                # weights / biases: whole array, resident across batch tiles
                pl.BlockSpec((d_in, d_hid), lambda i: (0, 0)),
                pl.BlockSpec((1, d_hid), lambda i: (0, 0)),
                pl.BlockSpec((d_hid, d_hid), lambda i: (0, 0)),
                pl.BlockSpec((1, d_hid), lambda i: (0, 0)),
                pl.BlockSpec((d_hid, d_out_p), lambda i: (0, 0)),
                pl.BlockSpec((1, d_out_p), lambda i: (0, 0)),
            ],
            out_specs=pl.BlockSpec((block_b, d_out_p), lambda i: (i, 0)),
        ),
        compiler_params=pltpu.CompilerParams(
            dimension_semantics=("parallel",)),
    )(x, w1, b1, w2, b2, w3, b3)

    return out[:B, :d_out]


def init_params(key, input_dim, hidden_dim, output_dim, dtype=jnp.float32):
    """Deterministic synthetic init matching nn.Linear shapes.

    PyTorch stores Linear.weight as (out, in); we store the transposed
    (in, out) layout the kernel consumes.
    """
    ks = jax.random.split(key, 6)

    def lin(kw, kb, fan_in, fan_out):
        bound = 1.0 / math.sqrt(fan_in)
        w = jax.random.uniform(kw, (fan_in, fan_out), dtype, -bound, bound)
        b = jax.random.uniform(kb, (1, fan_out), dtype, -bound, bound)
        return w, b

    w1, b1 = lin(ks[0], ks[1], input_dim, hidden_dim)
    w2, b2 = lin(ks[2], ks[3], hidden_dim, hidden_dim)
    w3, b3 = lin(ks[4], ks[5], hidden_dim, output_dim)
    return w1, b1, w2, b2, w3, b3


def reference_forward(x, w1, b1, w2, b2, w3, b3):
    h = _gelu_exact(x @ w1 + b1)
    h = _gelu_exact(h @ w2 + b2)
    return h @ w3 + b3


if __name__ == "__main__":
    # Small shapes consistent with the module (Phi MLP on visual features).
    # B=50 deliberately not a multiple of the chosen batch tile, OUTPUT_DIM=48
    # deliberately < 128, to exercise the padding / lane-dense-output paths.
    B, INPUT_DIM, HIDDEN_DIM, OUTPUT_DIM = 50, 64, 128, 48

    key = jax.random.PRNGKey(0)
    k_x, k_params = jax.random.split(key)

    x = jax.random.normal(k_x, (B, INPUT_DIM), dtype=jnp.float32)
    params = init_params(k_params, INPUT_DIM, HIDDEN_DIM, OUTPUT_DIM)

    out = text_inversion_forward(x, *params)   # default: f32 operands, erf GELU
    out = jax.block_until_ready(out)

    ref = reference_forward(x, *params)
    assert out.shape == (B, OUTPUT_DIM)
    assert jnp.allclose(out, ref, atol=1e-4, rtol=1e-4), "mismatch vs reference"

    print("KERNEL_OK")
</pallas_src>

<mosaic_0001>
module attributes {stable_mosaic.version = 11 : i64} {
  func.func @_text_inversion_kernel(%arg0: i32, %arg1: memref<32x64xf32, #tpu.memory_space<vmem>>, %arg2: memref<64x128xf32, #tpu.memory_space<vmem>>, %arg3: memref<1x128xf32, #tpu.memory_space<vmem>>, %arg4: memref<128x128xf32, #tpu.memory_space<vmem>>, %arg5: memref<1x128xf32, #tpu.memory_space<vmem>>, %arg6: memref<128x128xf32, #tpu.memory_space<vmem>>, %arg7: memref<1x128xf32, #tpu.memory_space<vmem>>, %arg8: memref<32x128xf32, #tpu.memory_space<vmem>>) attributes {dimension_semantics = [#tpu.dimension_semantics<parallel>], iteration_bounds = array<i64: 2>, scalar_prefetch = 0 : i64, scratch_operands = 0 : i64, tpu.core_type = #tpu.core_type<tc>, window_params = [{transform_indices = @transform_0, window_bounds = array<i64: 32, 64>}, {pipeline_mode = #tpu.pipeline_mode<synchronous>, transform_indices = @transform_1, window_bounds = array<i64: 64, 128>}, {pipeline_mode = #tpu.pipeline_mode<synchronous>, transform_indices = @transform_2, window_bounds = array<i64: 1, 128>}, {pipeline_mode = #tpu.pipeline_mode<synchronous>, transform_indices = @transform_3, window_bounds = array<i64: 128, 128>}, {pipeline_mode = #tpu.pipeline_mode<synchronous>, transform_indices = @transform_4, window_bounds = array<i64: 1, 128>}, {pipeline_mode = #tpu.pipeline_mode<synchronous>, transform_indices = @transform_5, window_bounds = array<i64: 128, 128>}, {pipeline_mode = #tpu.pipeline_mode<synchronous>, transform_indices = @transform_6, window_bounds = array<i64: 1, 128>}, {transform_indices = @transform_7, window_bounds = array<i64: 32, 128>}]} {
    %c0 = arith.constant 0 : index
    %c0_0 = arith.constant 0 : index
    %0 = vector.load %arg1[%c0, %c0_0] : memref<32x64xf32, #tpu.memory_space<vmem>>, vector<32x64xf32>
    %c0_1 = arith.constant 0 : index
    %c0_2 = arith.constant 0 : index
    %1 = vector.load %arg2[%c0_1, %c0_2] : memref<64x128xf32, #tpu.memory_space<vmem>>, vector<64x128xf32>
    %cst = arith.constant dense<0.000000e+00> : vector<32x128xf32>
    %2 = tpu.matmul %0, %1, %cst {dimension_numbers = #tpu.dot_dimension_numbers<[1], [0], [0], [1], [0, 0, 1, 1], [], []>} : vector<32x64xf32>, vector<64x128xf32>, vector<32x128xf32> -> vector<32x128xf32>
    %c0_3 = arith.constant 0 : index
    %c0_4 = arith.constant 0 : index
    %3 = vector.load %arg3[%c0_3, %c0_4] : memref<1x128xf32, #tpu.memory_space<vmem>>, vector<1x128xf32>
    %4 = vector.broadcast %3 : vector<1x128xf32> to vector<32x128xf32>
    %5 = arith.addf %2, %4 : vector<32x128xf32>
    %cst_5 = arith.constant 5.000000e-01 : f32
    %6 = vector.broadcast %cst_5 : f32 to vector<32x128xf32>
    %7 = arith.mulf %6, %5 : vector<32x128xf32>
    %cst_6 = arith.constant 0.707106769 : f32
    %8 = vector.broadcast %cst_6 : f32 to vector<32x128xf32>
    %9 = arith.mulf %5, %8 : vector<32x128xf32>
    %10 = math.erf %9 : vector<32x128xf32>
    %cst_7 = arith.constant 1.000000e+00 : f32
    %11 = vector.broadcast %cst_7 : f32 to vector<32x128xf32>
    %12 = arith.addf %11, %10 : vector<32x128xf32>
    %13 = arith.mulf %7, %12 : vector<32x128xf32>
    %c0_8 = arith.constant 0 : index
    %c0_9 = arith.constant 0 : index
    %14 = vector.load %arg4[%c0_8, %c0_9] : memref<128x128xf32, #tpu.memory_space<vmem>>, vector<128x128xf32>
    %cst_10 = arith.constant dense<0.000000e+00> : vector<32x128xf32>
    %15 = tpu.matmul %13, %14, %cst_10 {dimension_numbers = #tpu.dot_dimension_numbers<[1], [0], [0], [1], [0, 0, 1, 1], [], []>} : vector<32x128xf32>, vector<128x128xf32>, vector<32x128xf32> -> vector<32x128xf32>
    %c0_11 = arith.constant 0 : index
    %c0_12 = arith.constant 0 : index
    %16 = vector.load %arg5[%c0_11, %c0_12] : memref<1x128xf32, #tpu.memory_space<vmem>>, vector<1x128xf32>
    %17 = vector.broadcast %16 : vector<1x128xf32> to vector<32x128xf32>
    %18 = arith.addf %15, %17 : vector<32x128xf32>
    %cst_13 = arith.constant 5.000000e-01 : f32
    %19 = vector.broadcast %cst_13 : f32 to vector<32x128xf32>
    %20 = arith.mulf %19, %18 : vector<32x128xf32>
    %cst_14 = arith.constant 0.707106769 : f32
    %21 = vector.broadcast %cst_14 : f32 to vector<32x128xf32>
    %22 = arith.mulf %18, %21 : vector<32x128xf32>
    %23 = math.erf %22 : vector<32x128xf32>
    %cst_15 = arith.constant 1.000000e+00 : f32
    %24 = vector.broadcast %cst_15 : f32 to vector<32x128xf32>
    %25 = arith.addf %24, %23 : vector<32x128xf32>
    %26 = arith.mulf %20, %25 : vector<32x128xf32>
    %c0_16 = arith.constant 0 : index
    %c0_17 = arith.constant 0 : index
    %27 = vector.load %arg6[%c0_16, %c0_17] : memref<128x128xf32, #tpu.memory_space<vmem>>, vector<128x128xf32>
    %cst_18 = arith.constant dense<0.000000e+00> : vector<32x128xf32>
    %28 = tpu.matmul %26, %27, %cst_18 {dimension_numbers = #tpu.dot_dimension_numbers<[1], [0], [0], [1], [0, 0, 1, 1], [], []>} : vector<32x128xf32>, vector<128x128xf32>, vector<32x128xf32> -> vector<32x128xf32>
    %c0_19 = arith.constant 0 : index
    %c0_20 = arith.constant 0 : index
    %29 = vector.load %arg7[%c0_19, %c0_20] : memref<1x128xf32, #tpu.memory_space<vmem>>, vector<1x128xf32>
    %30 = vector.broadcast %29 : vector<1x128xf32> to vector<32x128xf32>
    %31 = arith.addf %28, %30 : vector<32x128xf32>
    %c0_21 = arith.constant 0 : index
    %c0_22 = arith.constant 0 : index
    %32 = vector.load %arg8[%c0_21, %c0_22] : memref<32x128xf32, #tpu.memory_space<vmem>>, vector<32x128xf32>
    tpu.vector_store %arg8[%c0_21, %c0_22], %31 {strides = array<i32>} : memref<32x128xf32, #tpu.memory_space<vmem>>, vector<32x128xf32>,
    return
  }
  func.func @transform_0(%arg0: i32) -> (i32, i32) {
    %c0_i32 = arith.constant 0 : i32
    %c0_i32_0 = arith.constant 0 : i32
    return %arg0, %c0_i32 : i32, i32
  }
  func.func @transform_1(%arg0: i32) -> (i32, i32) {
    %c0_i32 = arith.constant 0 : i32
    %c0_i32_0 = arith.constant 0 : i32
    %c0_i32_1 = arith.constant 0 : i32
    return %c0_i32, %c0_i32_0 : i32, i32
  }
  func.func @transform_2(%arg0: i32) -> (i32, i32) {
    %c0_i32 = arith.constant 0 : i32
    %c0_i32_0 = arith.constant 0 : i32
    %c0_i32_1 = arith.constant 0 : i32
    return %c0_i32, %c0_i32_0 : i32, i32
  }
  func.func @transform_3(%arg0: i32) -> (i32, i32) {
    %c0_i32 = arith.constant 0 : i32
    %c0_i32_0 = arith.constant 0 : i32
    %c0_i32_1 = arith.constant 0 : i32
    return %c0_i32, %c0_i32_0 : i32, i32
  }
  func.func @transform_4(%arg0: i32) -> (i32, i32) {
    %c0_i32 = arith.constant 0 : i32
    %c0_i32_0 = arith.constant 0 : i32
    %c0_i32_1 = arith.constant 0 : i32
    return %c0_i32, %c0_i32_0 : i32, i32
  }
  func.func @transform_5(%arg0: i32) -> (i32, i32) {
    %c0_i32 = arith.constant 0 : i32
    %c0_i32_0 = arith.constant 0 : i32
    %c0_i32_1 = arith.constant 0 : i32
    return %c0_i32, %c0_i32_0 : i32, i32
  }
  func.func @transform_6(%arg0: i32) -> (i32, i32) {
    %c0_i32 = arith.constant 0 : i32
    %c0_i32_0 = arith.constant 0 : i32
    %c0_i32_1 = arith.constant 0 : i32
    return %c0_i32, %c0_i32_0 : i32, i32
  }
  func.func @transform_7(%arg0: i32) -> (i32, i32) {
    %c0_i32 = arith.constant 0 : i32
    %c0_i32_0 = arith.constant 0 : i32
    return %arg0, %c0_i32 : i32, i32
  }
}

</mosaic_0001>

<bundles_post_ra>
// kernel: text_inversion_forward.1
= control target key start
LH: loop header
LB: loop body
LE: loop exit
PB: predicated region body
PF: predicated region fallthrough
CT: control target
= control target key end

     0   :  { %s964_s24 = smov 0   ;;  %s1297_s0 = inlined_call_operand.vmem [shape: f32[64,64], index: 0, kind: input, shape index: {}]   ;;  %s1298_s1 = inlined_call_operand.vmem [shape: f32[64,128], index: 1, kind: input, shape index: {}]   ;;  %s1299_s2 = inlined_call_operand.vmem [shape: f32[1,128], index: 2, kind: input, shape index: {}]   ;;  %s1300_s3 = inlined_call_operand.vmem [shape: f32[128,128], index: 3, kind: input, shape index: {}]   ;;  %s1301_s4 = inlined_call_operand.vmem [shape: f32[1,128], index: 4, kind: input, shape index: {}]   ;;  %s1302_s5 = inlined_call_operand.vmem [shape: f32[128,128], index: 5, kind: input, shape index: {}]   ;;  %s1303_s6 = inlined_call_operand.vmem [shape: f32[1,128], index: 6, kind: input, shape index: {}]   ;;  %s1304_s7 = inlined_call_operand.vmem [shape: f32[64,128], index: 7, kind: output, shape index: {}]  }
   0x1 LB: > { %s850_s25 = sadd.s32 4294967295, %s922_s24   ;;  %p854_p0 = scmp.ge.s32.totalorder %s922_s24, 1  ;;  %s922_s24 = sphi %s964_s24, %s17_s24  }
   0x2   : > { %p238_p1 = scmp.lt.s32.totalorder %s922_s24, 3 }
   0x4   : > { %p239_p2 = pnand %p854_p0, %p238_p1 }
   0x5   : > { %s855_s30 = sshll.u32 (!%p239_p2), %s850_s25, 2 }
   0x6   : > { %242 = sbr.rel (%p239_p2) target bundleno = 552 (0x228), region = 48  ;;  %p271_p3 = scmp.lt.s32.totalorder (!%p239_p2), %s855_s30, 7 }
   0xb   : > { %v293_v0 = vld [vmem:[%s1298_s1 + $0x38] sm:$0xff]  ;;  %v292_v1 = vld [vmem:[%s1298_s1 + $0x30] sm:$0xff]  ;;  %v291_v2 = vld [vmem:[%s1298_s1 + $0x28] sm:$0xff]  ;;  %s1306_s30 = smov (!%p271_p3, %s855_s30), 7  ;;  %vm298_vm0 = vcmask 523264  }
   0xc   : > { %319 = vmatpush.msra.mxu0 %v293_v0  ;;  %v290_v3 = vld [vmem:[%s1298_s1 + $0x20] sm:$0xff]  ;;  %v289_v4 = vld [vmem:[%s1298_s1 + $0x18] sm:$0xff]  ;;  %s856_s14 = sshll.u32 %s1306_s30, 3  ;;  %v288_v5 = vld [vmem:[%s1298_s1 + $0x10] sm:$0xff] }
   0xd   : > { %v287_v6 = vld [vmem:[%s1298_s1 + $0x8] sm:$0xff]  ;;  %s274_s21 = scalar_lea.vmem %s1297_s0, %s856_s14  ;;  %v286_v7 = vld [vmem:[%s1298_s1] sm:$0xff]  ;;  %v531_v12 = vld [vmem:[%s1300_s3 + $0x78] sm:$0xff]  ;;  %s280_s16 = scalar_lea.vmem %s1304_s7, %s856_s14 }
   0xe   : > { %320 = vmatpush.msra.mxu0 %v292_v1  ;;  %v282_v8 = vld [vmem:[%s274_s21] sm:$0xff]  ;;  %v283_v9 = vld [vmem:[%s274_s21 + $0x8] sm:$0xff]  ;;  %v284_v10 = vld [vmem:[%s274_s21 + $0x10] sm:$0xff]  ;;  %536 = vmatpush.msra.mxu1 %v531_v12 }
   0xf   : > { %v285_v11 = vld [vmem:[%s274_s21 + $0x18] sm:$0xff]  ;;  %873 = vmatpush.msra.mxu3 %v531_v12  ;;  %v530_v13 = vld [vmem:[%s1300_s3 + $0x70] sm:$0xff]  ;;  %v529_v14 = vld [vmem:[%s1300_s3 + $0x68] sm:$0xff] }
  0x10   : > { %321 = vmatpush.msra.mxu0 %v291_v2  ;;  %537 = vmatpush.msra.mxu1 %v530_v13  ;;  %v1016_v15 = vld [vmem:[%s1299_s2] ss:$0 sm:$0xff]  ;;  %v527_v17 = vld [vmem:[%s1300_s3 + $0x58] sm:$0xff]  ;;  %v526_v20 = vld [vmem:[%s1300_s3 + $0x50] sm:$0xff] }
  0x11   : > { %874 = vmatpush.msra.mxu3 %v530_v13  ;;  %v528_v16 = vld [vmem:[%s1300_s3 + $0x60] sm:$0xff]  ;;  %v525_v22 = vld [vmem:[%s1300_s3 + $0x48] sm:$0xff]  ;;  %v523_v26 = vld [vmem:[%s1300_s3 + $0x38] sm:$0xff] }
  0x12   : > { %322 = vmatpush.msra.mxu0 %v290_v3  ;;  %538 = vmatpush.msra.mxu1 %v529_v14  ;;  %v524_v24 = vld [vmem:[%s1300_s3 + $0x40] sm:$0xff]  ;;  %v522_v30 = vld [vmem:[%s1300_s3 + $0x30] sm:$0xff]  ;;  %v521_v34 = vld [vmem:[%s1300_s3 + $0x28] sm:$0xff] }
  0x13   : > { %875 = vmatpush.msra.mxu3 %v529_v14  ;;  %v520_v38 = vld [vmem:[%s1300_s3 + $0x20] sm:$0xff]  ;;  %v519_v42 = vld [vmem:[%s1300_s3 + $0x18] sm:$0xff]  ;;  %v518_v47 = vld [vmem:[%s1300_s3 + $0x10] sm:$0xff] }
  0x14   : > { %323 = vmatpush.msra.mxu0 %v289_v4  ;;  %539 = vmatpush.msra.mxu1 %v528_v16  ;;  %v517_v52 = vld [vmem:[%s1300_s3 + $0x8] sm:$0xff]  ;;  %v516_v57 = vld [vmem:[%s1300_s3] sm:$0xff] }
  0x15   : > { %876 = vmatpush.msra.mxu3 %v528_v16 }
  0x16   : > { %324 = vmatpush.msra.mxu0 %v288_v5  ;;  %540 = vmatpush.msra.mxu1 %v527_v17 }
  0x17   : > { %877 = vmatpush.msra.mxu3 %v527_v17 }
  0x18   : > { %325 = vmatpush.msra.mxu0 %v287_v6  ;;  %541 = vmatpush.msra.mxu1 %v526_v20 }
  0x19   : > { %878 = vmatpush.msra.mxu3 %v526_v20 }
  0x1a   : > { %326 = vmatpush.msra.mxu0 %v286_v7  ;;  %542 = vmatpush.msra.mxu1 %v525_v22 }
  0x1b   : > { %859 = vmatmul.msk.f32.vlgmr.msra.gmra.mxu0 %vm298_vm0, %v282_v8  ;;  %879 = vmatpush.msra.mxu3 %v525_v22 }
  0x1c   : > { %543 = vmatpush.msra.mxu1 %v524_v24 }
  0x1d   : > { %880 = vmatpush.msra.mxu3 %v524_v24 }
  0x1e   : > { %544 = vmatpush.msra.mxu1 %v523_v26 }
  0x1f   : > { %881 = vmatpush.msra.mxu3 %v523_v26 }
  0x20   : > { %545 = vmatpush.msra.mxu1 %v522_v30 }
  0x21   : > { %882 = vmatpush.msra.mxu3 %v522_v30 }
  0x22   : > { %546 = vmatpush.msra.mxu1 %v521_v34 }
  0x23   : > { %860 = vmatmul.msk.f32.gmra.mxu0 %vm298_vm0, %v283_v9  ;;  %883 = vmatpush.msra.mxu3 %v521_v34 }
  0x24   : > { %547 = vmatpush.msra.mxu1 %v520_v38 }
  0x25   : > { %884 = vmatpush.msra.mxu3 %v520_v38 }
  0x26   : > { %548 = vmatpush.msra.mxu1 %v519_v42 }
  0x27   : > { %885 = vmatpush.msra.mxu3 %v519_v42 }
  0x28   : > { %549 = vmatpush.msra.mxu1 %v518_v47 }
  0x29   : > { %886 = vmatpush.msra.mxu3 %v518_v47 }
  0x2a   : > { %550 = vmatpush.msra.mxu1 %v517_v52 }
  0x2b   : > { %861 = vmatmul.msk.f32.gmra.mxu0 %vm298_vm0, %v284_v10  ;;  %887 = vmatpush.msra.mxu3 %v517_v52 }
  0x2c   : > { %551 = vmatpush.msra.mxu1 %v516_v57 }
  0x2d   : > { %888 = vmatpush.msra.mxu3 %v516_v57 }
  0x33   : > { %862 = vmatmul.msk.f32.gmra.mxu0 %vm298_vm0, %v285_v11 }
  0x98   : > { %v328_v18 = vpop.f32.mrf.mxu0 }
  0x99   : > { %v1025_v19 = vadd.f32 %v1016_v15, %v328_v18 }
  0x9b   : > { %v1031_v21 = vmul.f32 0.70710677, %v1025_v19 }
  0x9d   : > { %v348_v23 = vmul.f32 %v1031_v21, %v1031_v21 }
  0x9f   : > { %v1041_v25 = vmin.f32 %v348_v23, 16.0 }
  0xa0   : > { %v331_v27 = vpop.f32.mrf.mxu0 }
  0xa1   : > { %v350_v28 = vmul.f32 2.1237322e-06, %v1041_v25  ;;  %v1048_v29 = vadd.f32 %v1016_v15, %v331_v27  ;;  %v361_v31 = vmul.f32 3.8918573e-05, %v1041_v25 }
  0xa3   : > { %v351_v32 = vadd.f32 0.00028619796, %v350_v28  ;;  %v1055_v33 = vmul.f32 0.70710677, %v1048_v29  ;;  %v362_v35 = vadd.f32 0.001143296, %v361_v31 }
  0xa5   : > { %v352_v36 = vmul.f32 %v351_v32, %v1041_v25  ;;  %v388_v37 = vmul.f32 %v1055_v33, %v1055_v33  ;;  %v363_v39 = vmul.f32 %v362_v35, %v1041_v25 }
  0xa7   : > { %v353_v40 = vadd.f32 0.0036580483, %v352_v36  ;;  %v1067_v41 = vmin.f32 %v388_v37, 16.0  ;;  %v364_v44 = vadd.f32 0.014752088, %v363_v39 }
  0xa8   : > { %v334_v43 = vpop.f32.mrf.mxu0 }
  0xa9   : > { %v390_v45 = vmul.f32 2.1237322e-06, %v1067_v41  ;;  %v1074_v46 = vadd.f32 %v1016_v15, %v334_v43  ;;  %v401_v48 = vmul.f32 3.8918573e-05, %v1067_v41  ;;  %v365_v49 = vmul.f32 %v364_v44, %v1041_v25 }
  0xaa   : > { %v354_v50 = vmul.f32 %v353_v40, %v1041_v25 }
  0xab   : > { %v391_v51 = vadd.f32 0.00028619796, %v390_v45  ;;  %v1086_v53 = vmul.f32 0.70710677, %v1074_v46  ;;  %v366_v54 = vadd.f32 0.112945676, %v365_v49 }
  0xac   : > { %v402_v55 = vadd.f32 0.001143296, %v401_v48  ;;  %v355_v61 = vadd.f32 0.05243302, %v354_v50 }
  0xad   : > { %v392_v56 = vmul.f32 %v391_v51, %v1067_v41  ;;  %v428_v58 = vmul.f32 %v1086_v53, %v1086_v53  ;;  %v367_v59 = vmul.f32 %v366_v54, %v1041_v25 }
  0xae   : > { %v403_v60 = vmul.f32 %v402_v55, %v1067_v41  ;;  %v356_v8 = vmul.f32 %v355_v61, %v1041_v25 }
  0xaf   : > { %v393_v62 = vadd.f32 0.0036580483, %v392_v56  ;;  %v1096_v63 = vmin.f32 %v428_v58, 16.0  ;;  %v368_v1 = vadd.f32 0.4994258, %v367_v59 }
  0xb0   : > { %v337_v0 = vpop.f32.mrf.mxu0  ;;  %v404_v2 = vadd.f32 0.014752088, %v403_v60  ;;  %v357_v17 = vadd.f32 0.18741608, %v356_v8 }
  0xb1   : > { %v1099_v3 = vadd.f32 %v1016_v15, %v337_v0  ;;  %v430_v4 = vmul.f32 2.1237322e-06, %v1096_v63  ;;  %v369_v5 = vmul.f32 %v368_v1, %v1041_v25  ;;  %v441_v7 = vmul.f32 3.8918573e-05, %v1096_v63 }
  0xb2   : > { %v405_v6 = vmul.f32 %v404_v2, %v1067_v41  ;;  %v394_v9 = vmul.f32 %v393_v62, %v1067_v41  ;;  %v358_v31 = vmul.f32 %v357_v17, %v1041_v25 }
  0xb3   : > { %v431_v10 = vadd.f32 0.00028619796, %v430_v4  ;;  %v1108_v11 = vmul.f32 0.70710677, %v1099_v3  ;;  %v370_v12 = vadd.f32 1.0, %v369_v5 }
  0xb4   : > { %v406_v13 = vadd.f32 0.112945676, %v405_v6  ;;  %v442_v14 = vadd.f32 0.001143296, %v441_v7  ;;  %v395_v20 = vadd.f32 0.05243302, %v394_v9 }
  0xb5   : > { %v432_v15 = vmul.f32 %v431_v10, %v1096_v63  ;;  %v468_v16 = vmul.f32 %v1108_v11, %v1108_v11  ;;  %900 = vrcp.f32 %v370_v12  ;;  %v359_v25 = vadd.f32 1.1283791, %v358_v31 }
  0xb6   : > { %v407_v18 = vmul.f32 %v406_v13, %v1067_v41  ;;  %v443_v23 = vmul.f32 %v442_v14, %v1096_v63  ;;  %v396_v35 = vmul.f32 %v395_v20, %v1067_v41  ;;  %v382_v49 = vand.u32 2147483648, %v370_v12 }
  0xb7   : > { %v1114_v22 = vmin.f32 %v468_v16, 16.0  ;;  %v433_v24 = vadd.f32 0.0036580483, %v432_v15  ;;  %v380_v52 = vand.u32 2147483647, %v370_v12  ;;  %vm376_vm2 = vweird.f32 %v370_v12 }
  0xb8   : > { %v408_v26 = vadd.f32 0.4994258, %v407_v18  ;;  %v444_v28 = vadd.f32 0.014752088, %v443_v23  ;;  %v397_v48 = vadd.f32 0.18741608, %v396_v35  ;;  %v360_v60 = vmul.f32 %v359_v25, %v1031_v21 }
  0xb9   : > { %v470_v27 = vmul.f32 2.1237322e-06, %v1114_v22  ;;  %v481_v30 = vmul.f32 3.8918573e-05, %v1114_v22  ;;  %v434_v42 = vmul.f32 %v433_v24, %v1096_v63  ;;  %v383_v61 = vor.u32 1.1754944e-38, %v382_v49 }
  0xba   : > { %v409_v32 = vmul.f32 %v408_v26, %v1067_v41  ;;  %v445_v37 = vmul.f32 %v444_v28, %v1096_v63  ;;  %v398_v1 = vmul.f32 %v397_v48, %v1067_v41  ;;  %vm381_vm4 = vcmp.eq.f32.partialorder %v380_v52, 8.507059e+37 }
  0xbb   : > { %v901_v34 = vpop.eup %900  ;;  %v471_v36 = vadd.f32 0.00028619796, %v470_v27  ;;  %v482_v38 = vadd.f32 0.001143296, %v481_v30  ;;  %v435_v55 = vadd.f32 0.05243302, %v434_v42 }
  0xbc   : > { %v372_v39 = vmul.f32 %v901_v34, %v370_v12  ;;  %v410_v40 = vadd.f32 1.0, %v409_v32  ;;  %v446_v43 = vadd.f32 0.112945676, %v445_v37  ;;  %vm377_vm1 = vweird.f32 %v901_v34 }
  0xbd   : > { %v483_v44 = vmul.f32 %v482_v38, %v1114_v22  ;;  %v472_v45 = vmul.f32 %v471_v36, %v1114_v22  ;;  %vm378_vm3 = vmor %vm376_vm2, %vm377_vm1  ;;  %v436_v5 = vmul.f32 %v435_v55, %v1096_v63  ;;  %v399_v13 = vadd.f32 1.1283791, %v398_v1 }
  0xbe   : > { %v373_v47 = vsub.f32 1.0, %v372_v39  ;;  %902 = vrcp.f32 %v410_v40  ;;  %v447_v50 = vmul.f32 %v446_v43, %v1096_v63  ;;  %v422_v15 = vand.u32 2147483648, %v410_v40 }
  0xbf   : > { %v484_v54 = vadd.f32 0.014752088, %v483_v44  ;;  %v473_v57 = vadd.f32 0.0036580483, %v472_v45  ;;  %v420_v41 = vand.u32 2147483647, %v410_v40  ;;  %vm416_vm6 = vweird.f32 %v410_v40 }
  0xc0   : > { %v374_v51 = vmul.f32 %v901_v34, %v373_v47  ;;  %v448_v56 = vadd.f32 0.4994258, %v447_v50  ;;  %v340_v18 = vmul.f32 0.5, %v1025_v19  ;;  %v437_v20 = vadd.f32 0.18741608, %v436_v5 }
  0xc1   : > { %v485_v59 = vmul.f32 %v484_v54, %v1114_v22  ;;  %v474_v8 = vmul.f32 %v473_v57, %v1114_v22  ;;  %v423_v30 = vor.u32 1.1754944e-38, %v422_v15  ;;  %v400_v31 = vmul.f32 %v399_v13, %v1055_v33  ;;  %v1154_v13 = vld [vmem:[%s1301_s4] ss:$0 sm:$0xff] }
  0xc2   : > { %v375_v58 = vadd.f32 %v901_v34, %v374_v51  ;;  %v449_v62 = vmul.f32 %v448_v56, %v1096_v63  ;;  %vm421_vm8 = vcmp.eq.f32.partialorder %v420_v41, 8.507059e+37  ;;  %v438_v36 = vmul.f32 %v437_v20, %v1096_v63  ;;  %v753_v15 = vld [vmem:[%s1302_s5 + $0x60] sm:$0xff]  ;;  %v752_v41 = vld [vmem:[%s1302_s5 + $0x58] sm:$0xff] }
  0xc3   : > { %v486_v4 = vadd.f32 0.112945676, %v485_v59  ;;  %v475_v23 = vadd.f32 0.05243302, %v474_v8  ;;  %v341_v43 = vmul.f32 0.5, %v1048_v29 }
  0xc4   : > { %v903_v0 = vpop.eup %902  ;;  %v379_v2 = vsel %vm378_vm3, %v901_v34, %v375_v58  ;;  %v450_v10 = vadd.f32 1.0, %v449_v62  ;;  %v439_v44 = vadd.f32 1.1283791, %v438_v36 }
  0xc5   : > { %v384_v6 = vsel %vm381_vm4, %v383_v61, %v379_v2  ;;  %v412_v7 = vmul.f32 %v903_v0, %v410_v40  ;;  %v487_v21 = vmul.f32 %v486_v4, %v1114_v22  ;;  %vm417_vm5 = vweird.f32 %v903_v0 }
  0xc6   : > { %v385_v9 = vmul.f32 %v384_v6, %v360_v60  ;;  %904 = vrcp.f32 %v450_v10  ;;  %vm418_vm7 = vmor %vm416_vm6, %vm417_vm5  ;;  %v476_v19 = vmul.f32 %v475_v23, %v1114_v22  ;;  %v462_v33 = vand.u32 2147483648, %v450_v10  ;;  %v750_v23 = vld [vmem:[%s1302_s5 + $0x48] sm:$0xff] }
  0xc7   : > { %v413_v12 = vsub.f32 1.0, %v412_v7  ;;  %v488_v17 = vadd.f32 0.4994258, %v487_v21  ;;  %v460_v48 = vand.u32 2147483647, %v450_v10  ;;  %vm456_vm10 = vweird.f32 %v450_v10 }
  0xc8   : > { %v863_v14 = vclamps-f32 %v385_v9, 1.0  ;;  %v477_v45 = vadd.f32 0.18741608, %v476_v19  ;;  %v463_v52 = vor.u32 1.1754944e-38, %v462_v33  ;;  %v440_v55 = vmul.f32 %v439_v44, %v1086_v53  ;;  %v746_v19 = vld [vmem:[%s1302_s5 + $0x28] sm:$0xff] }
  0xc9   : > { %v414_v16 = vmul.f32 %v903_v0, %v413_v12  ;;  %v489_v27 = vmul.f32 %v488_v17, %v1114_v22  ;;  %vm461_vm12 = vcmp.eq.f32.partialorder %v460_v48, 8.507059e+37  ;;  %v743_v48 = vld [vmem:[%s1302_s5 + $0x10] sm:$0xff] }
  0xca   : > { %v508_v24 = vadd.f32 1.0, %v863_v14  ;;  %v478_v51 = vmul.f32 %v477_v45, %v1114_v22  ;;  %v342_v22 = vmul.f32 0.5, %v1074_v46  ;;  %v756_v46 = vld [vmem:[%s1302_s5 + $0x78] sm:$0xff] }
  0xcb   : > { %v415_v26 = vadd.f32 %v903_v0, %v414_v16  ;;  %v490_v34 = vadd.f32 1.0, %v489_v27  ;;  %761 = vmatpush.msra.mxu2 %v756_v46  ;;  %v744_v45 = vld [vmem:[%s1302_s5 + $0x18] sm:$0xff] }
  0xcc   : > { %v512_v28 = vmul.f32 %v508_v24, %v340_v18  ;;  %v905_v35 = vpop.eup %904  ;;  %v479_v60 = vadd.f32 1.1283791, %v478_v51  ;;  %v751_v18 = vld [vmem:[%s1302_s5 + $0x50] sm:$0xff] }
  0xcd   : > { %v419_v32 = vsel %vm418_vm7, %v903_v0, %v415_v26  ;;  %v452_v39 = vmul.f32 %v905_v35, %v450_v10  ;;  %906 = vrcp.f32 %v490_v34  ;;  %vm457_vm9 = vweird.f32 %v905_v35  ;;  %v749_v26 = vld [vmem:[%s1302_s5 + $0x40] sm:$0xff] }
  0xce   : > { %552 = vmatmul.f32.vlgmr.msra.gmra.mxu1 %v512_v28  ;;  %v424_v37 = vsel %vm421_vm8, %v423_v30, %v419_v32  ;;  %vm458_vm11 = vmor %vm456_vm10, %vm457_vm9  ;;  %v502_v59 = vand.u32 2147483648, %v490_v34  ;;  %v500_v62 = vand.u32 2147483647, %v490_v34  ;;  %vm496_vm14 = vweird.f32 %v490_v34  ;;  %v748_v30 = vld [vmem:[%s1302_s5 + $0x38] sm:$0xff] }
  0xcf   : > { %v425_v38 = vmul.f32 %v424_v37, %v400_v31  ;;  %v453_v42 = vsub.f32 1.0, %v452_v39  ;;  %v480_v53 = vmul.f32 %v479_v60, %v1108_v11  ;;  %v343_v10 = vmul.f32 0.5, %v1099_v3  ;;  %v755_v11 = vld [vmem:[%s1302_s5 + $0x70] sm:$0xff]  ;;  %v754_v3 = vld [vmem:[%s1302_s5 + $0x68] sm:$0xff] }
  0xd0   : > { %v503_v4 = vor.u32 1.1754944e-38, %v502_v59  ;;  %vm501_vm0 = vcmp.eq.f32.partialorder %v500_v62, 8.507059e+37  ;;  %762 = vmatpush.msra.mxu2 %v755_v11 }
  0xd1   : > { %v864_v40 = vclamps-f32 %v425_v38, 1.0  ;;  %v454_v25 = vmul.f32 %v905_v35, %v453_v42  ;;  %v745_v42 = vld [vmem:[%s1302_s5 + $0x20] sm:$0xff] }
  0xd2   : > { %763 = vmatpush.msra.mxu2 %v754_v3 }
  0xd3   : > { %v509_v47 = vadd.f32 1.0, %v864_v40  ;;  %v907_v49 = vpop.eup %906  ;;  %v455_v50 = vadd.f32 %v905_v35, %v454_v25 }
  0xd4   : > { %v492_v54 = vmul.f32 %v907_v49, %v490_v34  ;;  %vm497_vm13 = vweird.f32 %v907_v49  ;;  %764 = vmatpush.msra.mxu2 %v753_v15  ;;  %v747_v34 = vld [vmem:[%s1302_s5 + $0x30] sm:$0xff] }
  0xd5   : > { %v513_v63 = vmul.f32 %v509_v47, %v341_v43  ;;  %v459_v29 = vsel %vm458_vm11, %v905_v35, %v455_v50  ;;  %vm498_vm15 = vmor %vm496_vm14, %vm497_vm13  ;;  %v742_v50 = vld [vmem:[%s1302_s5 + $0x8] sm:$0xff] }
  0xd6   : > { %v464_v56 = vsel %vm461_vm12, %v463_v52, %v459_v29  ;;  %v493_v57 = vsub.f32 1.0, %v492_v54  ;;  %765 = vmatpush.msra.mxu2 %v752_v41 }
  0xd7   : > { %555 = vmatmul.f32.vlgmr.msra.gmra.mxu3 %v513_v63  ;;  %v465_v58 = vmul.f32 %v464_v56, %v440_v55  ;;  %v741_v55 = vld [vmem:[%s1302_s5] sm:$0xff] }
  0xd8   : > { %v494_v61 = vmul.f32 %v907_v49, %v493_v57  ;;  %766 = vmatpush.msra.mxu2 %v751_v18 }
  0xd9   : > { %v865_v0 = vclamps-f32 %v465_v58, 1.0 }
  0xda   : > { %v495_v1 = vadd.f32 %v907_v49, %v494_v61  ;;  %767 = vmatpush.msra.mxu2 %v750_v23 }
  0xdb   : > { %v510_v2 = vadd.f32 1.0, %v865_v0 }
  0xdc   : > { %v499_v5 = vsel %vm498_vm15, %v907_v49, %v495_v1  ;;  %768 = vmatpush.msra.mxu2 %v749_v26 }
  0xdd   : > { %v514_v6 = vmul.f32 %v510_v2, %v342_v22  ;;  %v504_v7 = vsel %vm501_vm0, %v503_v4, %v499_v5 }
  0xde   : > { %v505_v8 = vmul.f32 %v504_v7, %v480_v53  ;;  %769 = vmatpush.msra.mxu2 %v748_v30 }
  0xdf   : > { %558 = vmatmul.f32.gmra.mxu3 %v514_v6 }
  0xe0   : > { %v866_v9 = vclamps-f32 %v505_v8, 1.0  ;;  %770 = vmatpush.msra.mxu2 %v747_v34 }
  0xe2   : > { %v511_v21 = vadd.f32 1.0, %v866_v9  ;;  %771 = vmatpush.msra.mxu2 %v746_v19 }
  0xe4   : > { %v515_v12 = vmul.f32 %v511_v21, %v343_v10  ;;  %772 = vmatpush.msra.mxu2 %v745_v42 }
  0xe6   : > { %773 = vmatpush.msra.mxu2 %v744_v45 }
  0xe7   : > { %561 = vmatmul.f32.gmra.mxu3 %v515_v12 }
  0xe8   : > { %774 = vmatpush.msra.mxu2 %v743_v48 }
  0xea   : > { %775 = vmatpush.msra.mxu2 %v742_v50 }
  0xec   : > { %776 = vmatpush.msra.mxu2 %v741_v55 }
 0x14b   : > { %v553_v14 = vpop.f32.mrf.mxu1 }
 0x14c   : > { %v1163_v16 = vadd.f32 %v1154_v13, %v553_v14 }
 0x14e   : > { %v1169_v17 = vmul.f32 0.70710677, %v1163_v16 }
 0x150   : > { %v573_v20 = vmul.f32 %v1169_v17, %v1169_v17 }
 0x152   : > { %v1179_v24 = vmin.f32 %v573_v20, 16.0 }
 0x154   : > { %v575_v27 = vmul.f32 2.1237322e-06, %v1179_v24  ;;  %v586_v28 = vmul.f32 3.8918573e-05, %v1179_v24 }
 0x156   : > { %v576_v31 = vadd.f32 0.00028619796, %v575_v27  ;;  %v587_v32 = vadd.f32 0.001143296, %v586_v28 }
 0x158   : > { %v577_v35 = vmul.f32 %v576_v31, %v1179_v24  ;;  %v588_v36 = vmul.f32 %v587_v32, %v1179_v24 }
 0x15a   : > { %v578_v37 = vadd.f32 0.0036580483, %v577_v35  ;;  %v556_v38 = vpop.f32.mrf.mxu3  ;;  %v589_v39 = vadd.f32 0.014752088, %v588_v36 }
 0x15b   : > { %v1198_v40 = vadd.f32 %v1154_v13, %v556_v38 }
 0x15c   : > { %v590_v43 = vmul.f32 %v589_v39, %v1179_v24  ;;  %v579_v33 = vmul.f32 %v578_v37, %v1179_v24 }
 0x15d   : > { %v1205_v44 = vmul.f32 0.70710677, %v1198_v40 }
 0x15e   : > { %v591_v47 = vadd.f32 0.112945676, %v590_v43  ;;  %v580_v51 = vadd.f32 0.05243302, %v579_v33 }
 0x15f   : > { %v613_v25 = vmul.f32 %v1205_v44, %v1205_v44 }
 0x160   : > { %v592_v49 = vmul.f32 %v591_v47, %v1179_v24  ;;  %v581_v61 = vmul.f32 %v580_v51, %v1179_v24 }
 0x161   : > { %v1217_v63 = vmin.f32 %v613_v25, 16.0 }
 0x162   : > { %v593_v52 = vadd.f32 0.4994258, %v592_v49  ;;  %v559_v56 = vpop.f32.mrf.mxu3  ;;  %v582_v53 = vadd.f32 0.18741608, %v581_v61 }
 0x163   : > { %v615_v54 = vmul.f32 2.1237322e-06, %v1217_v63  ;;  %v626_v29 = vmul.f32 3.8918573e-05, %v1217_v63  ;;  %v1229_v59 = vadd.f32 %v1154_v13, %v559_v56 }
 0x164   : > { %v594_v57 = vmul.f32 %v593_v52, %v1179_v24  ;;  %v583_v46 = vmul.f32 %v582_v53, %v1179_v24 }
 0x165   : > { %v616_v58 = vadd.f32 0.00028619796, %v615_v54  ;;  %v627_v60 = vadd.f32 0.001143296, %v626_v29  ;;  %v1234_v1 = vmul.f32 0.70710677, %v1229_v59 }
 0x166   : > { %v595_v62 = vadd.f32 1.0, %v594_v57  ;;  %v584_v26 = vadd.f32 1.1283791, %v583_v46 }
 0x167   : > { %v617_v0 = vmul.f32 %v616_v58, %v1217_v63  ;;  %v628_v22 = vmul.f32 %v627_v60, %v1217_v63  ;;  %v653_v2 = vmul.f32 %v1234_v1, %v1234_v1 }
 0x168   : > { %908 = vrcp.f32 %v595_v62  ;;  %v605_v32 = vand.u32 2147483647, %v595_v62  ;;  %v607_v34 = vand.u32 2147483648, %v595_v62  ;;  %vm601_vm2 = vweird.f32 %v595_v62 }
 0x169   : > { %v629_v4 = vadd.f32 0.014752088, %v628_v22  ;;  %v618_v5 = vadd.f32 0.0036580483, %v617_v0  ;;  %v1239_v6 = vmin.f32 %v653_v2, 16.0  ;;  %v585_v49 = vmul.f32 %v584_v26, %v1169_v17 }
 0x16a   : > { %v562_v8 = vpop.f32.mrf.mxu3  ;;  %v608_v25 = vor.u32 1.1754944e-38, %v607_v34  ;;  %vm606_vm4 = vcmp.eq.f32.partialorder %v605_v32, 8.507059e+37 }
 0x16b   : > { %v630_v7 = vmul.f32 %v629_v4, %v1217_v63  ;;  %v655_v9 = vmul.f32 2.1237322e-06, %v1239_v6  ;;  %v1244_v10 = vadd.f32 %v1154_v13, %v562_v8  ;;  %v666_v11 = vmul.f32 3.8918573e-05, %v1239_v6 }
 0x16c   : > { %v619_v3 = vmul.f32 %v618_v5, %v1217_v63 }
 0x16d   : > { %v631_v21 = vadd.f32 0.112945676, %v630_v7  ;;  %v656_v14 = vadd.f32 0.00028619796, %v655_v9  ;;  %v1250_v15 = vmul.f32 0.70710677, %v1244_v10 }
 0x16e   : > { %v909_v12 = vpop.eup %908  ;;  %v667_v20 = vadd.f32 0.001143296, %v666_v11  ;;  %v620_v30 = vadd.f32 0.05243302, %v619_v3 }
 0x16f   : > { %v597_v41 = vmul.f32 %v909_v12, %v595_v62  ;;  %v632_v18 = vmul.f32 %v631_v21, %v1217_v63  ;;  %v657_v23 = vmul.f32 %v656_v14, %v1239_v6  ;;  %v693_v13 = vmul.f32 %v1250_v15, %v1250_v15 }
 0x170   : > { %v668_v28 = vmul.f32 %v667_v20, %v1239_v6  ;;  %vm602_vm1 = vweird.f32 %v909_v12  ;;  %v621_v33 = vmul.f32 %v620_v30, %v1217_v63  ;;  %v565_v62 = vmul.f32 0.5, %v1163_v16 }
 0x171   : > { %v598_v27 = vsub.f32 1.0, %v597_v41  ;;  %v633_v24 = vadd.f32 0.4994258, %v632_v18  ;;  %v1257_v31 = vmin.f32 %v693_v13, 16.0  ;;  %v658_v37 = vadd.f32 0.0036580483, %v657_v23  ;;  %vm603_vm3 = vmor %vm601_vm2, %vm602_vm1 }
 0x172   : > { %v669_v19 = vadd.f32 0.014752088, %v668_v28  ;;  %v622_v57 = vadd.f32 0.18741608, %v621_v33 }
 0x173   : > { %v599_v35 = vmul.f32 %v909_v12, %v598_v27  ;;  %v634_v36 = vmul.f32 %v633_v24, %v1217_v63  ;;  %v695_v38 = vmul.f32 2.1237322e-06, %v1257_v31  ;;  %v706_v39 = vmul.f32 3.8918573e-05, %v1257_v31 }
 0x174   : > { %v670_v45 = vmul.f32 %v669_v19, %v1239_v6  ;;  %v659_v51 = vmul.f32 %v658_v37, %v1239_v6  ;;  %v623_v5 = vmul.f32 %v622_v57, %v1217_v63 }
 0x175   : > { %v600_v42 = vadd.f32 %v909_v12, %v599_v35  ;;  %v635_v43 = vadd.f32 1.0, %v634_v36  ;;  %v696_v47 = vadd.f32 0.00028619796, %v695_v38  ;;  %v707_v48 = vadd.f32 0.001143296, %v706_v39 }
 0x176   : > { %v671_v29 = vadd.f32 0.112945676, %v670_v45  ;;  %v660_v17 = vadd.f32 0.05243302, %v659_v51  ;;  %v624_v41 = vadd.f32 1.1283791, %v623_v5 }
 0x177   : > { %v604_v50 = vsel %vm603_vm3, %v909_v12, %v600_v42  ;;  %910 = vrcp.f32 %v635_v43  ;;  %v697_v54 = vmul.f32 %v696_v47, %v1257_v31  ;;  %v708_v56 = vmul.f32 %v707_v48, %v1257_v31 }
 0x178   : > { %v609_v52 = vsel %vm606_vm4, %v608_v25, %v604_v50  ;;  %v672_v60 = vmul.f32 %v671_v29, %v1239_v6  ;;  %v661_v12 = vmul.f32 %v660_v17, %v1239_v6  ;;  %v647_v16 = vand.u32 2147483648, %v635_v43 }
 0x179   : > { %v610_v55 = vmul.f32 %v609_v52, %v585_v49  ;;  %v709_v61 = vadd.f32 0.014752088, %v708_v56  ;;  %v698_v22 = vadd.f32 0.0036580483, %v697_v54  ;;  %v645_v20 = vand.u32 2147483647, %v635_v43 }
 0x17a   : > { %v673_v4 = vadd.f32 0.4994258, %v672_v60  ;;  %vm641_vm6 = vweird.f32 %v635_v43  ;;  %v662_v13 = vadd.f32 0.18741608, %v661_v12  ;;  %v648_v27 = vor.u32 1.1754944e-38, %v647_v16 }
 0x17b   : > { %v867_v58 = vclamps-f32 %v610_v55, 1.0  ;;  %v710_v53 = vmul.f32 %v709_v61, %v1257_v31  ;;  %v699_v11 = vmul.f32 %v698_v22, %v1257_v31  ;;  %v625_v24 = vmul.f32 %v624_v41, %v1205_v44 }
 0x17c   : > { %v674_v9 = vmul.f32 %v673_v4, %v1239_v6  ;;  %vm646_vm8 = vcmp.eq.f32.partialorder %v645_v20, 8.507059e+37  ;;  %v663_v19 = vmul.f32 %v662_v13, %v1239_v6  ;;  %v566_v42 = vmul.f32 0.5, %v1198_v40 }
 0x17d   : > { %v911_v0 = vpop.eup %910  ;;  %v733_v2 = vadd.f32 1.0, %v867_v58  ;;  %v711_v21 = vadd.f32 0.112945676, %v710_v53  ;;  %v700_v26 = vadd.f32 0.05243302, %v699_v11 }
 0x17e   : > { %v637_v7 = vmul.f32 %v911_v0, %v635_v43  ;;  %v675_v3 = vadd.f32 1.0, %v674_v9  ;;  %vm642_vm5 = vweird.f32 %v911_v0  ;;  %v664_v44 = vadd.f32 1.1283791, %v663_v19 }
 0x17f   : > { %v737_v8 = vmul.f32 %v733_v2, %v565_v62  ;;  %v712_v14 = vmul.f32 %v711_v21, %v1257_v31  ;;  %vm643_vm7 = vmor %vm641_vm6, %vm642_vm5  ;;  %v701_v37 = vmul.f32 %v700_v26, %v1257_v31  ;;  %v568_v9 = vmul.f32 0.5, %v1244_v10 }
 0x180   : > { %v638_v46 = vsub.f32 1.0, %v637_v7  ;;  %912 = vrcp.f32 %v675_v3  ;;  %v687_v47 = vand.u32 2147483648, %v675_v3  ;;  %v685_v49 = vand.u32 2147483647, %v675_v3 }
 0x181   : > { %777 = vmatmul.f32.vlgmr.msra.gmra.mxu2 %v737_v8  ;;  %v713_v23 = vadd.f32 0.4994258, %v712_v14  ;;  %v702_v33 = vadd.f32 0.18741608, %v701_v37  ;;  %vm681_vm10 = vweird.f32 %v675_v3  ;;  %v665_v40 = vmul.f32 %v664_v44, %v1234_v1 }
 0x182   : > { %v639_v18 = vmul.f32 %v911_v0, %v638_v46  ;;  %v688_v52 = vor.u32 1.1754944e-38, %v687_v47  ;;  %vm686_vm12 = vcmp.eq.f32.partialorder %v685_v49, 8.507059e+37 }
 0x183   : > { %v714_v30 = vmul.f32 %v713_v23, %v1257_v31  ;;  %v703_v6 = vmul.f32 %v702_v33, %v1257_v31  ;;  %v567_v31 = vmul.f32 0.5, %v1229_v59  ;;  %v899_v59 = vld [vmem:[%s1303_s6] ss:$0 sm:$0xff] }
 0x184   : > { %v640_v63 = vadd.f32 %v911_v0, %v639_v18 }
 0x185   : > { %v715_v35 = vadd.f32 1.0, %v714_v30  ;;  %v704_v60 = vadd.f32 1.1283791, %v703_v6 }
 0x186   : > { %v644_v28 = vsel %vm643_vm7, %v911_v0, %v640_v63  ;;  %v913_v36 = vpop.eup %912 }
 0x187   : > { %v649_v32 = vsel %vm646_vm8, %v648_v27, %v644_v28  ;;  %v677_v39 = vmul.f32 %v913_v36, %v675_v3  ;;  %914 = vrcp.f32 %v715_v35  ;;  %vm682_vm9 = vweird.f32 %v913_v36 }
 0x188   : > { %v650_v34 = vmul.f32 %v649_v32, %v625_v24  ;;  %vm683_vm11 = vmor %vm681_vm10, %vm682_vm9  ;;  %v727_v58 = vand.u32 2147483648, %v715_v35  ;;  %v725_v62 = vand.u32 2147483647, %v715_v35  ;;  %vm721_vm14 = vweird.f32 %v715_v35 }
 0x189   : > { %v678_v45 = vsub.f32 1.0, %v677_v39  ;;  %v705_v1 = vmul.f32 %v704_v60, %v1250_v15 }
 0x18a   : > { %v868_v38 = vclamps-f32 %v650_v34, 1.0  ;;  %v728_v2 = vor.u32 1.1754944e-38, %v727_v58  ;;  %vm726_vm0 = vcmp.eq.f32.partialorder %v725_v62, 8.507059e+37 }
 0x18b   : > { %v679_v48 = vmul.f32 %v913_v36, %v678_v45 }
 0x18c   : > { %v734_v43 = vadd.f32 1.0, %v868_v38 }
 0x18d   : > { %v915_v50 = vpop.eup %914  ;;  %v680_v51 = vadd.f32 %v913_v36, %v679_v48 }
 0x18e   : > { %v738_v25 = vmul.f32 %v734_v43, %v566_v42  ;;  %v717_v54 = vmul.f32 %v915_v50, %v715_v35  ;;  %vm722_vm13 = vweird.f32 %v915_v50 }
 0x18f   : > { %v684_v55 = vsel %vm683_vm11, %v913_v36, %v680_v51  ;;  %vm723_vm15 = vmor %vm721_vm14, %vm722_vm13 }
 0x190   : > { %780 = vmatmul.f32.gmra.mxu2 %v738_v25  ;;  %v689_v29 = vsel %vm686_vm12, %v688_v52, %v684_v55  ;;  %v718_v56 = vsub.f32 1.0, %v717_v54 }
 0x191   : > { %v690_v57 = vmul.f32 %v689_v29, %v665_v40 }
 0x192   : > { %v719_v61 = vmul.f32 %v915_v50, %v718_v56 }
 0x193   : > { %v869_v17 = vclamps-f32 %v690_v57, 1.0 }
 0x194   : > { %v720_v0 = vadd.f32 %v915_v50, %v719_v61 }
 0x195   : > { %v735_v22 = vadd.f32 1.0, %v869_v17 }
 0x196   : > { %v724_v4 = vsel %vm723_vm15, %v915_v50, %v720_v0 }
 0x197   : > { %v739_v53 = vmul.f32 %v735_v22, %v567_v31  ;;  %v729_v5 = vsel %vm726_vm0, %v728_v2, %v724_v4 }
 0x198   : > { %v730_v7 = vmul.f32 %v729_v5, %v705_v1 }
 0x199   : > { %783 = vmatmul.f32.gmra.mxu2 %v739_v53 }
 0x19a   : > { %v870_v8 = vclamps-f32 %v730_v7, 1.0 }
 0x19c   : > { %v736_v21 = vadd.f32 1.0, %v870_v8 }
 0x19e   : > { %v740_v12 = vmul.f32 %v736_v21, %v568_v9 }
 0x1a1   : > { %786 = vmatmul.f32.gmra.mxu2 %v740_v12 }
 0x204   : > { %v778_v15 = vpop.f32.mrf.mxu2 }
 0x205   : > { %v779_v46 = vadd.f32 %v899_v59, %v778_v15 }
 0x207   : > { %790 = vst [vmem:[%s280_s16] sm:$0xff] %v779_v46 }
 0x213   : > { %v781_v11 = vpop.f32.mrf.mxu2 }
 0x214   : > { %v782_v16 = vadd.f32 %v899_v59, %v781_v11 }
 0x216   : > { %791 = vst [vmem:[%s280_s16 + $0x8] sm:$0xff] %v782_v16 }
 0x21c   : > { %v784_v3 = vpop.f32.mrf.mxu2 }
 0x21d   : > { %v785_v10 = vadd.f32 %v899_v59, %v784_v3 }
 0x21f   : > { %792 = vst [vmem:[%s280_s16 + $0x10] sm:$0xff] %v785_v10 }
 0x224   : > { %v787_v14 = vpop.f32.mrf.mxu2 }
 0x225   : > { %v788_v41 = vadd.f32 %v899_v59, %v787_v14 }
 0x227   : > { %793 = vst [vmem:[%s280_s16 + $0x18] sm:$0xff] %v788_v41 }
 0x228 PF: > { %s17_s24 = sadd.s32 1, %s922_s24  }
 0x229   : > { %p14_p4 = scmp.ge.s32.totalorder %s17_s24, 4  }
 0x22b   :  { %16 = sbr.rel (!%p14_p4) target bundleno = 1 (0x1), region = 78 }

</bundles_post_ra>
